<compile_context>
chip_gen: v6e
topology: v6e:2x2x1
jax: 0.10.0
libtpu: 0.0.40
codegen_flags: <defaults>
</compile_context>

<pallas_src>
import numpy as np
import jax
import jax.numpy as jnp
from jax import lax
from jax.experimental import pallas as pl
from jax.experimental.pallas import tpu as pltpu

IN_DIM = 16          # AE in_dim
UNIT = 8             # bottleneck width
BATCH = 8            # demo batch size
EPS = 1e-5           # BatchNorm1d eps
_LANES = 128
_SHIFT = IN_DIM.bit_length() - 1          # log2(IN_DIM); IN_DIM is a power of 2
assert IN_DIM & (IN_DIM - 1) == 0

# (name, din, dout) in application order; also defines the slab packing layout.
_LAYERS = (
    ("a1", IN_DIM, 128),             # encoder: Linear+BN folded, ReLU
    ("a2", 128, 64),
    ("a3", 64, UNIT),
    ("a4", UNIT, 64),                # decoder: 2x folded+ReLU, Linear+Sigmoid
    ("a5", 64, 128),
    ("a6", 128, IN_DIM),
    ("wb", IN_DIM * IN_DIM, 128),    # nn.Bilinear, flattened (i,j) -> rows
    ("a7", 128, 64),                 # BiNN head: folded+ReLU, Linear+Sigmoid
    ("a8", 64, 1),
)
_W_OFF = {}
_off = 0
for _name, _din, _dout in _LAYERS:
    _W_OFF[_name] = _off
    _off += _din
_W_ROWS = _off                                    # 856 rows (multiple of 8)
_B_SLOT = {name: i for i, (name, _, _) in enumerate(_LAYERS)}
_B_COLS = _LANES * len(_LAYERS)                   # 1152 (128-aligned bias slots)
_DIMS = {name: (din, dout) for name, din, dout in _LAYERS}
_OUT_W = _LANES                                   # lane-dense packed output


# --------------------------------------------------------------------------
# Kernel: whole AE forward for one batch tile (encode -> decode -> BiNN).
# --------------------------------------------------------------------------
def _ae_kernel(x_ref, w_ref, b_ref, out_ref):
    f32 = jnp.float32
    x = x_ref[...]
    tb = x.shape[0]

    def affine(h, name):
        din, dout = _DIMS[name]
        off = _W_OFF[name]
        w = w_ref[off:off + din, 0:dout]                       # 8/128-aligned slab slice
        slot = _B_SLOT[name] * _LANES
        b = b_ref[:, slot:slot + dout]
        return jnp.dot(h, w, preferred_element_type=f32) + b

    relu = lambda z: jnp.maximum(z, 0.0)

    # ----- encode -----
    h = relu(affine(x, "a1"))
    h = relu(affine(h, "a2"))
    code = relu(affine(h, "a3"))

    # ----- decode -----
    d = relu(affine(code, "a4"))
    d = relu(affine(d, "a5"))
    x_rec = jax.nn.sigmoid(affine(d, "a6"))

    # ----- BiNN (nn.Bilinear) as a single K=256 MXU matmul -----
    # z[b, i*IN_DIM + j] = x[b, i] * x_rec[b, j];  feat = z @ wb_flat + cb.
    # zx / zr are produced by tiny 0/1 selection matmuls (no reshapes).
    kk = IN_DIM * IN_DIM
    row = lax.broadcasted_iota(jnp.int32, (IN_DIM, kk), 0)
    col = lax.broadcasted_iota(jnp.int32, (IN_DIM, kk), 1)
    sel_hi = ((col >> _SHIFT) == row).astype(f32)          # picks x[b, k // IN_DIM]
    sel_lo = ((col & (IN_DIM - 1)) == row).astype(f32)     # picks x_rec[b, k % IN_DIM]
    zx = jnp.dot(x, sel_hi, preferred_element_type=f32)
    zr = jnp.dot(x_rec, sel_lo, preferred_element_type=f32)
    feat = affine(zx * zr, "wb")

    g = relu(affine(feat, "a7"))
    logit = jax.nn.sigmoid(affine(g, "a8"))

    # ----- one lane-dense output slab: [x_rec(16) | code(8) | logit(1) | pad] -----
    pad = jnp.zeros((tb, _OUT_W - (IN_DIM + UNIT + 1)), f32)
    out_ref[...] = jnp.concatenate([x_rec, code, logit, pad], axis=1)


# --------------------------------------------------------------------------
# Wrapper
# --------------------------------------------------------------------------
def _round_up(n, m):
    return (n + m - 1) // m * m


def ae_forward(x, wslab, bslab, *, batch_tile=512):
    b = x.shape[0]
    tb = min(batch_tile, _round_up(b, 8))
    bp = _round_up(b, tb)
    if bp != b:
        x = jnp.concatenate([x, jnp.zeros((bp - b, IN_DIM), x.dtype)], axis=0)

    out = pl.pallas_call(
        _ae_kernel,
        grid=(bp // tb,),
        in_specs=[
            pl.BlockSpec((tb, IN_DIM), lambda i: (i, 0)),        # batch tile of x
            pl.BlockSpec((_W_ROWS, _LANES), lambda i: (0, 0)),   # weight slab (resident)
            pl.BlockSpec((1, _B_COLS), lambda i: (0, 0)),        # bias slab (resident)
        ],
        out_specs=pl.BlockSpec((tb, _OUT_W), lambda i: (i, 0)),
        out_shape=jax.ShapeDtypeStruct((bp, _OUT_W), jnp.float32),
        compiler_params=pltpu.CompilerParams(
            dimension_semantics=("parallel",)),
    )(x, wslab, bslab)

    out = out[:b]
    x_rec = out[:, :IN_DIM]
    code = out[:, IN_DIM:IN_DIM + UNIT]
    logit = out[:, IN_DIM + UNIT:IN_DIM + UNIT + 1]
    return x_rec, code, logit


# --------------------------------------------------------------------------
# Deterministic synthetic parameters (eval-mode BN folding) + host packing
# --------------------------------------------------------------------------
def make_params(key):
    keys = iter(jax.random.split(key, 64))

    def lin(din, dout):
        w = jax.random.normal(next(keys), (din, dout), jnp.float32) / jnp.sqrt(float(din))
        b = 0.1 * jax.random.normal(next(keys), (dout,), jnp.float32)
        return w, b

    def folded(din, dout):
        # Linear + BatchNorm1d(eval, running stats) folded into y = x @ A + c
        w, b = lin(din, dout)
        gamma = 1.0 + 0.1 * jax.random.normal(next(keys), (dout,), jnp.float32)
        beta = 0.1 * jax.random.normal(next(keys), (dout,), jnp.float32)
        rmean = 0.1 * jax.random.normal(next(keys), (dout,), jnp.float32)
        rvar = 1.0 + 0.1 * jax.random.uniform(next(keys), (dout,), jnp.float32)
        s = gamma / jnp.sqrt(rvar + EPS)
        return w * s[None, :], (b - rmean) * s + beta

    p = {}
    p["a1"] = folded(IN_DIM, 128)
    p["a2"] = folded(128, 64)
    p["a3"] = folded(64, UNIT)
    p["a4"] = folded(UNIT, 64)
    p["a5"] = folded(64, 128)
    p["a6"] = lin(128, IN_DIM)
    # nn.Bilinear weight (out=128, in1=16, in2=16) -> (in1*in2, out), row
    # index k = i*IN_DIM + j, matching the kernel's z ordering.
    wbil = jax.random.normal(next(keys), (128, IN_DIM, IN_DIM), jnp.float32) / float(IN_DIM)
    wbf = jnp.transpose(wbil, (1, 2, 0)).reshape(IN_DIM * IN_DIM, 128)
    cb = 0.1 * jax.random.normal(next(keys), (128,), jnp.float32)
    p["wb"] = (wbf, cb)
    p["a7"] = folded(128, 64)
    p["a8"] = lin(64, 1)
    return p


def pack_params(params):
    """Pack all weights into one (856,128) slab and all biases into (1,1152)."""
    wslab = np.zeros((_W_ROWS, _LANES), np.float32)
    bslab = np.zeros((1, _B_COLS), np.float32)
    for name, din, dout in _LAYERS:
        w, b = params[name]
        off = _W_OFF[name]
        wslab[off:off + din, :dout] = np.asarray(w, np.float32)
        slot = _B_SLOT[name] * _LANES
        bslab[0, slot:slot + dout] = np.asarray(b, np.float32).reshape(-1)
    return jnp.asarray(wslab), jnp.asarray(bslab)


# Pure-JAX reference of the same (eval-mode) forward, for verification.
def reference(x, params):
    relu = lambda z: jnp.maximum(z, 0.0)

    def aff(h, name):
        w, b = params[name]
        return h @ w + b

    h = relu(aff(x, "a1"))
    h = relu(aff(h, "a2"))
    code = relu(aff(h, "a3"))
    d = relu(aff(code, "a4"))
    d = relu(aff(d, "a5"))
    x_rec = jax.nn.sigmoid(aff(d, "a6"))
    z = (x[:, :, None] * x_rec[:, None, :]).reshape(x.shape[0], IN_DIM * IN_DIM)
    feat = aff(z, "wb")
    g = relu(aff(feat, "a7"))
    logit = jax.nn.sigmoid(aff(g, "a8"))
    return x_rec, code, logit


if __name__ == "__main__":
    key = jax.random.PRNGKey(0)
    pkey, xkey = jax.random.split(key)
    params = make_params(pkey)
    wslab, bslab = pack_params(params)
    x = jax.random.uniform(xkey, (BATCH, IN_DIM), jnp.float32)

    outs = jax.block_until_ready(ae_forward(x, wslab, bslab))
    refs = reference(x, params)

    for o, r in zip(outs, refs):
        assert o.shape == r.shape and o.dtype == r.dtype
        assert jnp.allclose(o, r, atol=1e-5, rtol=1e-5), float(jnp.max(jnp.abs(o - r)))

    # TODO(synk): training-mode Dropout / batch-statistic BatchNorm not modeled
    # (forward implemented with eval-mode semantics).
    print("KERNEL_OK")
</pallas_src>

<mosaic_0001>
module attributes {stable_mosaic.version = 11 : i64} {
  func.func @_ae_kernel(%arg0: i32, %arg1: memref<8x16xf32, #tpu.memory_space<vmem>>, %arg2: memref<856x128xf32, #tpu.memory_space<vmem>>, %arg3: memref<1x1152xf32, #tpu.memory_space<vmem>>, %arg4: memref<8x128xf32, #tpu.memory_space<vmem>>) attributes {dimension_semantics = [#tpu.dimension_semantics<parallel>], iteration_bounds = array<i64: 1>, scalar_prefetch = 0 : i64, scratch_operands = 0 : i64, tpu.core_type = #tpu.core_type<tc>, window_params = [{transform_indices = @transform_0, window_bounds = array<i64: 8, 16>}, {pipeline_mode = #tpu.pipeline_mode<synchronous>, transform_indices = @transform_1, window_bounds = array<i64: 856, 128>}, {pipeline_mode = #tpu.pipeline_mode<synchronous>, transform_indices = @transform_2, window_bounds = array<i64: 1, 1152>}, {transform_indices = @transform_3, window_bounds = array<i64: 8, 128>}]} {
    %c0 = arith.constant 0 : index
    %c0_0 = arith.constant 0 : index
    %0 = vector.load %arg1[%c0, %c0_0] : memref<8x16xf32, #tpu.memory_space<vmem>>, vector<8x16xf32>
    %c0_1 = arith.constant 0 : index
    %c0_2 = arith.constant 0 : index
    %1 = vector.load %arg2[%c0_1, %c0_2] : memref<856x128xf32, #tpu.memory_space<vmem>>, vector<16x128xf32>
    %c0_3 = arith.constant 0 : index
    %c0_4 = arith.constant 0 : index
    %2 = vector.load %arg3[%c0_3, %c0_4] : memref<1x1152xf32, #tpu.memory_space<vmem>>, vector<1x128xf32>
    %cst = arith.constant dense<0.000000e+00> : vector<8x128xf32>
    %3 = tpu.matmul %0, %1, %cst {dimension_numbers = #tpu.dot_dimension_numbers<[1], [0], [0], [1], [0, 0, 1, 1], [], []>} : vector<8x16xf32>, vector<16x128xf32>, vector<8x128xf32> -> vector<8x128xf32>
    %4 = vector.broadcast %2 : vector<1x128xf32> to vector<8x128xf32>
    %5 = arith.addf %3, %4 : vector<8x128xf32>
    %cst_5 = arith.constant 0.000000e+00 : f32
    %6 = vector.broadcast %cst_5 : f32 to vector<8x128xf32>
    %7 = arith.maximumf %5, %6 : vector<8x128xf32>
    %c16 = arith.constant 16 : index
    %c0_6 = arith.constant 0 : index
    %8 = vector.load %arg2[%c16, %c0_6] : memref<856x128xf32, #tpu.memory_space<vmem>>, vector<128x64xf32>
    %c0_7 = arith.constant 0 : index
    %c128 = arith.constant 128 : index
    %9 = vector.load %arg3[%c0_7, %c128] : memref<1x1152xf32, #tpu.memory_space<vmem>>, vector<1x64xf32>
    %cst_8 = arith.constant dense<0.000000e+00> : vector<8x64xf32>
    %10 = tpu.matmul %7, %8, %cst_8 {dimension_numbers = #tpu.dot_dimension_numbers<[1], [0], [0], [1], [0, 0, 1, 1], [], []>} : vector<8x128xf32>, vector<128x64xf32>, vector<8x64xf32> -> vector<8x64xf32>
    %11 = vector.broadcast %9 : vector<1x64xf32> to vector<8x64xf32>
    %12 = arith.addf %10, %11 : vector<8x64xf32>
    %cst_9 = arith.constant 0.000000e+00 : f32
    %13 = vector.broadcast %cst_9 : f32 to vector<8x64xf32>
    %14 = arith.maximumf %12, %13 : vector<8x64xf32>
    %c144 = arith.constant 144 : index
    %c0_10 = arith.constant 0 : index
    %15 = vector.load %arg2[%c144, %c0_10] : memref<856x128xf32, #tpu.memory_space<vmem>>, vector<64x8xf32>
    %c0_11 = arith.constant 0 : index
    %c256 = arith.constant 256 : index
    %16 = vector.load %arg3[%c0_11, %c256] : memref<1x1152xf32, #tpu.memory_space<vmem>>, vector<1x8xf32>
    %cst_12 = arith.constant dense<0.000000e+00> : vector<8x8xf32>
    %17 = tpu.matmul %14, %15, %cst_12 {dimension_numbers = #tpu.dot_dimension_numbers<[1], [0], [0], [1], [0, 0, 1, 1], [], []>} : vector<8x64xf32>, vector<64x8xf32>, vector<8x8xf32> -> vector<8x8xf32>
    %18 = vector.broadcast %16 : vector<1x8xf32> to vector<8x8xf32>
    %19 = arith.addf %17, %18 : vector<8x8xf32>
    %cst_13 = arith.constant 0.000000e+00 : f32
    %20 = vector.broadcast %cst_13 : f32 to vector<8x8xf32>
    %21 = arith.maximumf %19, %20 : vector<8x8xf32>
    %c208 = arith.constant 208 : index
    %c0_14 = arith.constant 0 : index
    %22 = vector.load %arg2[%c208, %c0_14] : memref<856x128xf32, #tpu.memory_space<vmem>>, vector<8x64xf32>
    %c0_15 = arith.constant 0 : index
    %c384 = arith.constant 384 : index
    %23 = vector.load %arg3[%c0_15, %c384] : memref<1x1152xf32, #tpu.memory_space<vmem>>, vector<1x64xf32>
    %cst_16 = arith.constant dense<0.000000e+00> : vector<8x64xf32>
    %24 = tpu.matmul %21, %22, %cst_16 {dimension_numbers = #tpu.dot_dimension_numbers<[1], [0], [0], [1], [0, 0, 1, 1], [], []>} : vector<8x8xf32>, vector<8x64xf32>, vector<8x64xf32> -> vector<8x64xf32>
    %25 = vector.broadcast %23 : vector<1x64xf32> to vector<8x64xf32>
    %26 = arith.addf %24, %25 : vector<8x64xf32>
    %cst_17 = arith.constant 0.000000e+00 : f32
    %27 = vector.broadcast %cst_17 : f32 to vector<8x64xf32>
    %28 = arith.maximumf %26, %27 : vector<8x64xf32>
    %c216 = arith.constant 216 : index
    %c0_18 = arith.constant 0 : index
    %29 = vector.load %arg2[%c216, %c0_18] : memref<856x128xf32, #tpu.memory_space<vmem>>, vector<64x128xf32>
    %c0_19 = arith.constant 0 : index
    %c512 = arith.constant 512 : index
    %30 = vector.load %arg3[%c0_19, %c512] : memref<1x1152xf32, #tpu.memory_space<vmem>>, vector<1x128xf32>
    %cst_20 = arith.constant dense<0.000000e+00> : vector<8x128xf32>
    %31 = tpu.matmul %28, %29, %cst_20 {dimension_numbers = #tpu.dot_dimension_numbers<[1], [0], [0], [1], [0, 0, 1, 1], [], []>} : vector<8x64xf32>, vector<64x128xf32>, vector<8x128xf32> -> vector<8x128xf32>
    %32 = vector.broadcast %30 : vector<1x128xf32> to vector<8x128xf32>
    %33 = arith.addf %31, %32 : vector<8x128xf32>
    %cst_21 = arith.constant 0.000000e+00 : f32
    %34 = vector.broadcast %cst_21 : f32 to vector<8x128xf32>
    %35 = arith.maximumf %33, %34 : vector<8x128xf32>
    %c280 = arith.constant 280 : index
    %c0_22 = arith.constant 0 : index
    %36 = vector.load %arg2[%c280, %c0_22] : memref<856x128xf32, #tpu.memory_space<vmem>>, vector<128x16xf32>
    %c0_23 = arith.constant 0 : index
    %c640 = arith.constant 640 : index
    %37 = vector.load %arg3[%c0_23, %c640] : memref<1x1152xf32, #tpu.memory_space<vmem>>, vector<1x16xf32>
    %cst_24 = arith.constant dense<0.000000e+00> : vector<8x16xf32>
    %38 = tpu.matmul %35, %36, %cst_24 {dimension_numbers = #tpu.dot_dimension_numbers<[1], [0], [0], [1], [0, 0, 1, 1], [], []>} : vector<8x128xf32>, vector<128x16xf32>, vector<8x16xf32> -> vector<8x16xf32>
    %39 = vector.broadcast %37 : vector<1x16xf32> to vector<8x16xf32>
    %40 = arith.addf %38, %39 : vector<8x16xf32>
    %41 = arith.negf %40 : vector<8x16xf32>
    %42 = math.exp %41 : vector<8x16xf32>
    %cst_25 = arith.constant 1.000000e+00 : f32
    %43 = vector.broadcast %cst_25 : f32 to vector<8x16xf32>
    %44 = arith.addf %43, %42 : vector<8x16xf32>
    %45 = arith.divf %43, %44 : vector<8x16xf32>
    %46 = tpu.iota {dimensions = array<i32: 0>} : vector<16x256xi32>
    %47 = tpu.iota {dimensions = array<i32: 1>} : vector<16x256xi32>
    %c4_i32 = arith.constant 4 : i32
    %48 = vector.broadcast %c4_i32 : i32 to vector<16x256xi32>
    %49 = arith.shrsi %47, %48 : vector<16x256xi32>
    %50 = arith.cmpi eq, %49, %46 : vector<16x256xi32>
    %51 = arith.extui %50 : vector<16x256xi1> to vector<16x256xi32>
    %52 = arith.sitofp %51 : vector<16x256xi32> to vector<16x256xf32>
    %c15_i32 = arith.constant 15 : i32
    %53 = vector.broadcast %c15_i32 : i32 to vector<16x256xi32>
    %54 = arith.andi %47, %53 : vector<16x256xi32>
    %55 = arith.cmpi eq, %54, %46 : vector<16x256xi32>
    %56 = arith.extui %55 : vector<16x256xi1> to vector<16x256xi32>
    %57 = arith.sitofp %56 : vector<16x256xi32> to vector<16x256xf32>
    %cst_26 = arith.constant dense<0.000000e+00> : vector<8x256xf32>
    %58 = tpu.matmul %0, %52, %cst_26 {dimension_numbers = #tpu.dot_dimension_numbers<[1], [0], [0], [1], [0, 0, 1, 1], [], []>} : vector<8x16xf32>, vector<16x256xf32>, vector<8x256xf32> -> vector<8x256xf32>
    %cst_27 = arith.constant dense<0.000000e+00> : vector<8x256xf32>
    %59 = tpu.matmul %45, %57, %cst_27 {dimension_numbers = #tpu.dot_dimension_numbers<[1], [0], [0], [1], [0, 0, 1, 1], [], []>} : vector<8x16xf32>, vector<16x256xf32>, vector<8x256xf32> -> vector<8x256xf32>
    %60 = arith.mulf %58, %59 : vector<8x256xf32>
    %c408 = arith.constant 408 : index
    %c0_28 = arith.constant 0 : index
    %61 = vector.load %arg2[%c408, %c0_28] : memref<856x128xf32, #tpu.memory_space<vmem>>, vector<256x128xf32>
    %c0_29 = arith.constant 0 : index
    %c768 = arith.constant 768 : index
    %62 = vector.load %arg3[%c0_29, %c768] : memref<1x1152xf32, #tpu.memory_space<vmem>>, vector<1x128xf32>
    %cst_30 = arith.constant dense<0.000000e+00> : vector<8x128xf32>
    %63 = tpu.matmul %60, %61, %cst_30 {dimension_numbers = #tpu.dot_dimension_numbers<[1], [0], [0], [1], [0, 0, 1, 1], [], []>} : vector<8x256xf32>, vector<256x128xf32>, vector<8x128xf32> -> vector<8x128xf32>
    %64 = vector.broadcast %62 : vector<1x128xf32> to vector<8x128xf32>
    %65 = arith.addf %63, %64 : vector<8x128xf32>
    %c664 = arith.constant 664 : index
    %c0_31 = arith.constant 0 : index
    %66 = vector.load %arg2[%c664, %c0_31] : memref<856x128xf32, #tpu.memory_space<vmem>>, vector<128x64xf32>
    %c0_32 = arith.constant 0 : index
    %c896 = arith.constant 896 : index
    %67 = vector.load %arg3[%c0_32, %c896] : memref<1x1152xf32, #tpu.memory_space<vmem>>, vector<1x64xf32>
    %cst_33 = arith.constant dense<0.000000e+00> : vector<8x64xf32>
    %68 = tpu.matmul %65, %66, %cst_33 {dimension_numbers = #tpu.dot_dimension_numbers<[1], [0], [0], [1], [0, 0, 1, 1], [], []>} : vector<8x128xf32>, vector<128x64xf32>, vector<8x64xf32> -> vector<8x64xf32>
    %69 = vector.broadcast %67 : vector<1x64xf32> to vector<8x64xf32>
    %70 = arith.addf %68, %69 : vector<8x64xf32>
    %cst_34 = arith.constant 0.000000e+00 : f32
    %71 = vector.broadcast %cst_34 : f32 to vector<8x64xf32>
    %72 = arith.maximumf %70, %71 : vector<8x64xf32>
    %c792 = arith.constant 792 : index
    %c0_35 = arith.constant 0 : index
    %73 = vector.load %arg2[%c792, %c0_35] : memref<856x128xf32, #tpu.memory_space<vmem>>, vector<64x1xf32>
    %c0_36 = arith.constant 0 : index
    %c1024 = arith.constant 1024 : index
    %74 = vector.load %arg3[%c0_36, %c1024] : memref<1x1152xf32, #tpu.memory_space<vmem>>, vector<1x1xf32>
    %cst_37 = arith.constant dense<0.000000e+00> : vector<8x1xf32>
    %75 = tpu.matmul %72, %73, %cst_37 {dimension_numbers = #tpu.dot_dimension_numbers<[1], [0], [0], [1], [0, 0, 1, 1], [], []>} : vector<8x64xf32>, vector<64x1xf32>, vector<8x1xf32> -> vector<8x1xf32>
    %76 = vector.broadcast %74 : vector<1x1xf32> to vector<8x1xf32>
    %77 = arith.addf %75, %76 : vector<8x1xf32>
    %78 = arith.negf %77 : vector<8x1xf32>
    %79 = math.exp %78 : vector<8x1xf32>
    %cst_38 = arith.constant 1.000000e+00 : f32
    %80 = vector.broadcast %cst_38 : f32 to vector<8x1xf32>
    %81 = arith.addf %80, %79 : vector<8x1xf32>
    %82 = arith.divf %80, %81 : vector<8x1xf32>
    %cst_39 = arith.constant 0.000000e+00 : f32
    %83 = vector.broadcast %cst_39 : f32 to vector<8x103xf32>
    %84 = tpu.concatenate %45, %21, %82, %83 in 1 : vector<8x16xf32>, vector<8x8xf32>, vector<8x1xf32>, vector<8x103xf32> -> vector<8x128xf32>
    %c0_40 = arith.constant 0 : index
    %c0_41 = arith.constant 0 : index
    %85 = vector.load %arg4[%c0_40, %c0_41] : memref<8x128xf32, #tpu.memory_space<vmem>>, vector<8x128xf32>
    tpu.vector_store %arg4[%c0_40, %c0_41], %84 {strides = array<i32>} : memref<8x128xf32, #tpu.memory_space<vmem>>, vector<8x128xf32>,
    return
  }
  func.func @transform_0(%arg0: i32) -> (i32, i32) {
    %c0_i32 = arith.constant 0 : i32
    %c0_i32_0 = arith.constant 0 : i32
    return %arg0, %c0_i32 : i32, i32
  }
  func.func @transform_1(%arg0: i32) -> (i32, i32) {
    %c0_i32 = arith.constant 0 : i32
    %c0_i32_0 = arith.constant 0 : i32
    %c0_i32_1 = arith.constant 0 : i32
    return %c0_i32, %c0_i32_0 : i32, i32
  }
  func.func @transform_2(%arg0: i32) -> (i32, i32) {
    %c0_i32 = arith.constant 0 : i32
    %c0_i32_0 = arith.constant 0 : i32
    %c0_i32_1 = arith.constant 0 : i32
    return %c0_i32, %c0_i32_0 : i32, i32
  }
  func.func @transform_3(%arg0: i32) -> (i32, i32) {
    %c0_i32 = arith.constant 0 : i32
    %c0_i32_0 = arith.constant 0 : i32
    return %arg0, %c0_i32 : i32, i32
  }
}

</mosaic_0001>

<bundles_post_ra>
// kernel: tpu_custom_call.1
= control target key start
LH: loop header
LB: loop body
LE: loop exit
PB: predicated region body
PF: predicated region fallthrough
CT: control target
= control target key end

     0   :  { %8 = vsyncpa [#allocation3], 0  ;;  %s1681_s0 = inlined_call_operand.hbm [shape: f32[8,16], index: 0, kind: input, shape index: {}]   ;;  %s1682_s1 = inlined_call_operand.hbm [shape: f32[856,128], index: 1, kind: input, shape index: {}]   ;;  %s1683_s2 = inlined_call_operand.hbm [shape: f32[1,1152], index: 2, kind: input, shape index: {}]   ;;  %s1684_s3 = inlined_call_operand.hbm [shape: f32[8,128], index: 3, kind: output, shape index: {}]  }
   0x1   :  { %9 = vsyncpa [#allocation6], 0 }
   0x2   :  { %10 = vsyncpa [#allocation4], 0  ;;  %s1530_s12 = smov [#allocation5]  }
   0x3   :  { %s26_s13 = sshll.u32 %s1530_s12, 4  ;;  %s27_s13 = int_to_ptr.vmem [resolvable:$true] %s26_s13 }
   0x4   :  { %s1452_s14 = scalar_lea.vmem %s27_s13, 13696  ;;  %p1457_p1 = scmp.lt.s32.totalorder %s27_s13, %s27_s13 }
   0x5   :  { %p1453_p0 = scmp.ne.s32.totalorder %s27_s13, %s1452_s14  ;;  %p1458_p2 = scmp.lt.s32.totalorder %s1452_s14, %s1452_s14 }
   0x7   :  { %p1459_p3 = por %p1458_p2, %p1457_p1 }
   0x9   :  { %p1460_p4 = pnand %p1459_p3, %p1453_p0 }
   0xb   :  { %1463 = shalt.err (!%p1460_p4)
}
   0xc   :  { %s1531_s15 = smov 128   ;;  %s1532_s16 = smov 8  }
   0xd   :  { %32 = dma.hbm_to_vmem [thread:$0]  %s1682_s1, 13696, %s27_s13, [#allocation6], %s1531_s15, %s1531_s15, %s1532_s16  }
   0xe   :  { %s1533_s19 = smov [#allocation2]   ;;  %s1534_s21 = smov [#allocation7]  }
   0xf   :  { %s17_s20 = sshll.u32 %s1533_s19, 4  ;;  %s39_s22 = sshll.u32 %s1534_s21, 4  ;;  %s18_s20 = int_to_ptr.vmem [resolvable:$true] %s17_s20  ;;  %s40_s22 = int_to_ptr.vmem [resolvable:$true] %s39_s22 }
  0x10   :  { %s1472_s23 = scalar_lea.vmem %s18_s20, 128  ;;  %p1477_p6 = scmp.lt.s32.totalorder %s18_s20, %s18_s20 }
  0x11   :  { %p1473_p5 = scmp.ne.s32.totalorder %s18_s20, %s1472_s23  ;;  %p1478_p7 = scmp.lt.s32.totalorder %s1472_s23, %s1472_s23 }
  0x13   :  { %p1479_p8 = por %p1478_p7, %p1477_p6 }
  0x15   :  { %p1480_p9 = pnand %p1479_p8, %p1473_p5 }
  0x17   :  { %1483 = shalt.err (!%p1480_p9)
}
  0x18   :  { %20 = dma.hbm_to_vmem [thread:$0]  %s1681_s0, 128, %s18_s20, [#allocation3]  }
  0x19   :  { %s1492_s26 = scalar_lea.vmem %s40_s22, 144  ;;  %s1496_s1 = scalar_lea.vmem %s40_s22, 160 }
  0x1a   :  { %p1493_p10 = scmp.ne.s32.totalorder %s40_s22, %s1492_s26  ;;  %p1497_p11 = scmp.lt.s32.totalorder %s40_s22, %s40_s22 }
  0x1b   :  { %p1498_p12 = scmp.lt.s32.totalorder %s1496_s1, %s1492_s26 }
  0x1d   :  { %p1499_p13 = por %p1498_p12, %p1497_p11 }
  0x1f   :  { %p1500_p0 = pnand %p1499_p13, %p1493_p10 }
  0x21   :  { %1503 = shalt.err (!%p1500_p0)
}
  0x22   :  { %42 = dma.hbm_to_vmem [thread:$0]  %s1683_s2, 144, %s40_s22, [#allocation6]  }
  0x23   :  { %1524 = dma.done.wait [#allocation3], 128  }
  0x24   :  { %1525 = vsyncadd [#allocation3], 4294967168 }
  0x25   :  { %1526 = dma.done.wait [#allocation6], 13840  }
  0x26   :  { %1527 = vsyncadd [#allocation6], 4294953456  ;;  %v1535_v0 = vmov 0.0   ;;  %vm1536_vm0 = vmmov 0   ;;  %v54_v1 = vld [vmem:[#allocation5 + $0x8] sm:$0xff]  ;;  %v53_v2 = vld [vmem:[#allocation5] sm:$0xff] }
  0x27   :  { %1251 = vmatprep.subr.mxu0 %v1535_v0  ;;  %1255 = vmatprep.mubr.msk.f32.mxu0 %vm1536_vm0, %v1535_v0  ;;  %v1576_v3 = vld [vmem:[#allocation2] sm:$0xff]  ;;  %vm62_vm1 = vcmask 130048   ;;  %v152_v4 = vld [vmem:[#allocation5 + $0x88] sm:$0xff]  ;;  %v151_v5 = vld [vmem:[#allocation5 + $0x80] sm:$0xff]  ;;  %vm246_vm2 = vcmask 523264   ;;  %vm329_vm3 = vcmask 64512  }
  0x28   :  { %1258 = vmatprep.subr.mxu1 %v1535_v0  ;;  %1290 = vmatprep.mubr.msk.f32.mxu1 %vm1536_vm0, %v1535_v0  ;;  %v150_v6 = vld [vmem:[#allocation5 + $0x78] sm:$0xff]  ;;  %v149_v7 = vld [vmem:[#allocation5 + $0x70] sm:$0xff]  ;;  %v148_v8 = vld [vmem:[#allocation5 + $0x68] sm:$0xff]  ;;  %s1537_s0 = smov 16   ;;  %s1539_s2 = smov 24   ;;  %vm1078_vm12 = vcmask 195584  }
  0x29   :  { %1252 = vmatpush3.msra.mxu0 %v54_v1  ;;  %1259 = vmatpush3.msra.mxu1 %v152_v4  ;;  %v147_v9 = vld [vmem:[#allocation5 + $0x60] sm:$0xff]  ;;  %v146_v10 = vld [vmem:[#allocation5 + $0x58] sm:$0xff]  ;;  %v145_v11 = vld [vmem:[#allocation5 + $0x50] sm:$0xff]  ;;  %s1540_s29 = smov [#allocation8]   ;;  %vm1080_vm13 = vcmask 203776  }
  0x2a   :  { %1253 = vmatprep.subr.mxu0 %v1535_v0  ;;  %1260 = vmatprep.subr.mxu1 %v1535_v0  ;;  %v144_v12 = vld [vmem:[#allocation5 + $0x48] sm:$0xff]  ;;  %v143_v13 = vld [vmem:[#allocation5 + $0x40] sm:$0xff]  ;;  %v142_v14 = vld [vmem:[#allocation5 + $0x38] sm:$0xff]  ;;  %s1089_s30 = sshll.u32 %s1540_s29, 4  ;;  %s1090_s30 = int_to_ptr.vmem [resolvable:$true] %s1089_s30 }
  0x2b   :  { %1254 = vmatpush3.msra.mxu0 %v53_v2  ;;  %1261 = vmatpush3.msra.mxu1 %v151_v5  ;;  %v141_v15 = vld [vmem:[#allocation5 + $0x30] sm:$0xff]  ;;  %v140_v16 = vld [vmem:[#allocation5 + $0x28] sm:$0xff]  ;;  %v139_v17 = vld [vmem:[#allocation5 + $0x20] sm:$0xff]  ;;  %s1504_s4 = scalar_lea.vmem %s1090_s30, 128  ;;  %p1509_p2 = scmp.lt.s32.totalorder %s1090_s30, %s1090_s30 }
  0x2c   :  { %1256 = vmatmul.mubr.msk.f32.vlgmr.msra.gmra.mxu0 %vm62_vm1, %v1576_v3  ;;  %1262 = vmatprep.subr.mxu1 %v1535_v0  ;;  %v138_v18 = vld [vmem:[#allocation5 + $0x18] sm:$0xff]  ;;  %v137_v19 = vld [vmem:[#allocation5 + $0x10] sm:$0xff]  ;;  %v238_v20 = vld [vmem:[#allocation5 + $0xc8] sm:$0xff]  ;;  %p1505_p1 = scmp.ne.s32.totalorder %s1090_s30, %s1504_s4  ;;  %p1510_p3 = scmp.lt.s32.totalorder %s1504_s4, %s1504_s4 }
  0x2d   :  { %1293 = vmatprep.subr.mxu0 %v1535_v0  ;;  %1263 = vmatpush3.msra.mxu1 %v150_v6  ;;  %v237_v21 = vld [vmem:[#allocation5 + $0xc0] sm:$0xff]  ;;  %v236_v22 = vld [vmem:[#allocation5 + $0xb8] sm:$0xff]  ;;  %v235_v23 = vld [vmem:[#allocation5 + $0xb0] sm:$0xff] }
  0x2e   :  { %1309 = vmatprep.mubr.msk.f32.mxu0 %vm1536_vm0, %v1535_v0  ;;  %1264 = vmatprep.subr.mxu1 %v1535_v0  ;;  %v234_v24 = vld [vmem:[#allocation5 + $0xa8] sm:$0xff]  ;;  %v1099_v25 = vld [vmem:[#allocation7] ss:$0 sm:$0xff]  ;;  %v233_v30 = vld [vmem:[#allocation5 + $0xa0] sm:$0xff]  ;;  %p1511_p4 = por %p1510_p3, %p1509_p2 }
  0x2f   :  { %1265 = vmatpush3.msra.mxu1 %v149_v7  ;;  %1294 = vmatpush3.msra.mxu0 %v238_v20  ;;  %v232_v31 = vld [vmem:[#allocation5 + $0x98] sm:$0xff]  ;;  %v231_v32 = vld [vmem:[#allocation5 + $0x90] sm:$0xff]  ;;  %v410_v45 = vld [vmem:[#allocation5 + $0x108] sm:$0xff] }
  0x30   :  { %1266 = vmatprep.subr.mxu1 %v1535_v0  ;;  %1295 = vmatprep.subr.mxu0 %v1535_v0  ;;  %v1101_v33 = vld [vmem:[#allocation7 + $0x1] ss:$0 sm:$0xff]  ;;  %v321_v38 = vld [vmem:[#allocation5 + $0xd0] sm:$0xff]  ;;  %v1102_v39 = vld [vmem:[#allocation7 + $0x2] ss:$0 sm:$0xff]  ;;  %p1512_p5 = pnand %p1511_p4, %p1505_p1 }
  0x31   :  { %1267 = vmatpush3.msra.mxu1 %v148_v8  ;;  %1296 = vmatpush3.msra.mxu0 %v237_v21  ;;  %v411_v44 = vld [vmem:[#allocation5 + $0x110] sm:$0xff]  ;;  %v409_v46 = vld [vmem:[#allocation5 + $0x100] sm:$0xff]  ;;  %v408_v47 = vld [vmem:[#allocation5 + $0xf8] sm:$0xff] }
  0x32   :  { %1268 = vmatprep.subr.mxu1 %v1535_v0  ;;  %1297 = vmatprep.subr.mxu0 %v1535_v0  ;;  %v407_v48 = vld [vmem:[#allocation5 + $0xf0] sm:$0xff]  ;;  %v406_v49 = vld [vmem:[#allocation5 + $0xe8] sm:$0xff]  ;;  %v405_v50 = vld [vmem:[#allocation5 + $0xe0] sm:$0xff] }
  0x33   :  { %1269 = vmatpush3.msra.mxu1 %v147_v9  ;;  %1298 = vmatpush3.msra.mxu0 %v236_v22  ;;  %v404_v51 = vld [vmem:[#allocation5 + $0xd8] sm:$0xff]  ;;  %v508_v52 = vld [vmem:[#allocation5 + $0x190] sm:$0xff]  ;;  %v507_v53 = vld [vmem:[#allocation5 + $0x188] sm:$0xff] }
  0x34   :  { %1270 = vmatprep.subr.mxu1 %v1535_v0  ;;  %1299 = vmatprep.subr.mxu0 %v1535_v0  ;;  %v506_v54 = vld [vmem:[#allocation5 + $0x180] sm:$0xff]  ;;  %v505_v55 = vld [vmem:[#allocation5 + $0x178] sm:$0xff]  ;;  %v504_v56 = vld [vmem:[#allocation5 + $0x170] sm:$0xff] }
  0x35   :  { %1271 = vmatpush3.msra.mxu1 %v146_v10  ;;  %1300 = vmatpush3.msra.mxu0 %v235_v23  ;;  %v503_v57 = vld [vmem:[#allocation5 + $0x168] sm:$0xff]  ;;  %v502_v58 = vld [vmem:[#allocation5 + $0x160] sm:$0xff]  ;;  %v501_v59 = vld [vmem:[#allocation5 + $0x158] sm:$0xff] }
  0x36   :  { %1272 = vmatprep.subr.mxu1 %v1535_v0  ;;  %1301 = vmatprep.subr.mxu0 %v1535_v0  ;;  %v500_v60 = vld [vmem:[#allocation5 + $0x150] sm:$0xff]  ;;  %v499_v61 = vld [vmem:[#allocation5 + $0x148] sm:$0xff]  ;;  %v498_v62 = vld [vmem:[#allocation5 + $0x140] sm:$0xff] }
  0x37   :  { %1273 = vmatpush3.msra.mxu1 %v145_v11  ;;  %1302 = vmatpush3.msra.mxu0 %v234_v24  ;;  %v497_v63 = vld [vmem:[#allocation5 + $0x138] sm:$0xff]  ;;  %v496_v1 = vld [vmem:[#allocation5 + $0x130] sm:$0xff]  ;;  %v495_v8 = vld [vmem:[#allocation5 + $0x128] sm:$0xff] }
  0x38   :  { %1274 = vmatprep.subr.mxu1 %v1535_v0  ;;  %1303 = vmatprep.subr.mxu0 %v1535_v0  ;;  %v1104_v2 = vld [vmem:[#allocation7 + $0x3] ss:$0 sm:$0xff]  ;;  %v494_v9 = vld [vmem:[#allocation5 + $0x120] sm:$0xff]  ;;  %v1106_v11 = vld [vmem:[#allocation7 + $0x4] ss:$0 sm:$0xff] }
  0x39   :  { %1275 = vmatpush3.msra.mxu1 %v144_v12  ;;  %1304 = vmatpush3.msra.mxu0 %v233_v30  ;;  %v493_v10 = vld [vmem:[#allocation5 + $0x118] sm:$0xff] }
  0x3a   :  { %1276 = vmatprep.subr.mxu1 %v1535_v0  ;;  %1305 = vmatprep.subr.mxu0 %v1535_v0 }
  0x3b   :  { %1277 = vmatpush3.msra.mxu1 %v143_v13  ;;  %1306 = vmatpush3.msra.mxu0 %v232_v31 }
  0x3c   :  { %1278 = vmatprep.subr.mxu1 %v1535_v0  ;;  %1307 = vmatprep.subr.mxu0 %v1535_v0 }
  0x3d   :  { %1279 = vmatpush3.msra.mxu1 %v142_v14  ;;  %1308 = vmatpush3.msra.mxu0 %v231_v32 }
  0x3e   :  { %1280 = vmatprep.subr.mxu1 %v1535_v0  ;;  %1312 = vmatprep.subr.mxu0 %v1535_v0 }
  0x3f   :  { %1281 = vmatpush3.msra.mxu1 %v141_v15 }
  0x40   :  { %1282 = vmatprep.subr.mxu1 %v1535_v0 }
  0x41   :  { %1283 = vmatpush3.msra.mxu1 %v140_v16  ;;  %v592_v16 = vlaneseq }
  0x42   :  { %1284 = vmatprep.subr.mxu1 %v1535_v0 }
  0x43   :  { %1285 = vmatpush3.msra.mxu1 %v139_v17  ;;  %v596_v17 = vand.u32 127, %v592_v16 }
  0x44   :  { %1286 = vmatprep.subr.mxu1 %v1535_v0 }
  0x45   :  { %1287 = vmatpush3.msra.mxu1 %v138_v18  ;;  %v593_v18 = vshrl.u32 %v592_v16, 7  ;;  %v598_v20 = vshra.s32 %v596_v17, 4  ;;  %v612_v24 = vand.u32 15, %v596_v17 }
  0x46   :  { %1288 = vmatprep.subr.mxu1 %v1535_v0 }
  0x47   :  { %1289 = vmatpush3.msra.mxu1 %v137_v19  ;;  %v597_v19 = vadd.s32 128, %v596_v17  ;;  %v594_v21 = vadd.s32 8, %v593_v18  ;;  %vm600_vm7 = vcmp.eq.s32.totalorder %v598_v20, %v593_v18  ;;  %vm614_vm11 = vcmp.eq.s32.totalorder %v612_v24, %v593_v18 }
  0x48   :  { %1336 = vmatprep.subr.mxu1 %v1535_v0 }
  0x49   :  { %v599_v22 = vshra.s32 %v597_v19, 4  ;;  %v613_v23 = vand.u32 15, %v597_v19  ;;  %vm602_vm5 = vcmp.eq.s32.totalorder %v598_v20, %v594_v21  ;;  %vm616_vm9 = vcmp.eq.s32.totalorder %v612_v24, %v594_v21  ;;  %v882_v24 = vld [vmem:[#allocation5 + $0x298] sm:$0xff] }
  0x4b   :  { %vm603_vm4 = vcmp.eq.s32.totalorder %v599_v22, %v594_v21  ;;  %vm601_vm6 = vcmp.eq.s32.totalorder %v599_v22, %v593_v18  ;;  %vm617_vm8 = vcmp.eq.s32.totalorder %v613_v23, %v594_v21  ;;  %vm615_vm10 = vcmp.eq.s32.totalorder %v613_v23, %v593_v18  ;;  %v885_v21 = vld [vmem:[#allocation5 + $0x2b0] sm:$0xff]  ;;  %v884_v22 = vld [vmem:[#allocation5 + $0x2a8] sm:$0xff]  ;;  %v883_v23 = vld [vmem:[#allocation5 + $0x2a0] sm:$0xff] }
  0xec   :  { %v132_v26 = vpop.f32.mrf.mxu0 }
  0xed   :  { %v133_v27 = vadd.f32 %v1099_v25, %v132_v26  ;;  %v1538_v25 = vmov 1.0   ;;  %v804_v26 = vld [vmem:[#allocation5 + $0x290] sm:$0xff] }
  0xee   :  { %v1257_v28 = vpop.f32.mrf.mxu0 }
  0xef   :  { %v136_v29 = vmax.f32 %v133_v27, 0.0  ;;  %v1108_v27 = vld [vmem:[#allocation7 + $0x5] ss:$0 sm:$0xff] }
  0xf1   :  { %1291 = vmatmul.mubr.f32.vlgmr.msra.gmra.mxu1 %v136_v29 }
  0xf2   :  { %1368 = vmatprep.mubr.msk.f32.mxu1 %vm1536_vm0, %v1535_v0  ;;  %1337 = vmatpush3.msra.mxu1 %v508_v52  ;;  %v779_v52 = vld [vmem:[#allocation5 + $0x1c8] sm:$0xff] }
  0xf3   :  { %1338 = vmatprep.subr.mxu1 %v1535_v0 }
  0xf4   :  { %1339 = vmatpush3.msra.mxu1 %v507_v53  ;;  %v794_v53 = vld [vmem:[#allocation5 + $0x240] sm:$0xff] }
  0xf5   :  { %1340 = vmatprep.subr.mxu1 %v1535_v0 }
  0xf6   :  { %1341 = vmatpush3.msra.mxu1 %v506_v54  ;;  %v778_v54 = vld [vmem:[#allocation5 + $0x1c0] sm:$0xff] }
  0xf7   :  { %1342 = vmatprep.subr.mxu1 %v1535_v0 }
  0xf8   :  { %1343 = vmatpush3.msra.mxu1 %v505_v55  ;;  %v793_v55 = vld [vmem:[#allocation5 + $0x238] sm:$0xff] }
  0xf9   :  { %1344 = vmatprep.subr.mxu1 %v1535_v0 }
  0xfa   :  { %1345 = vmatpush3.msra.mxu1 %v504_v56  ;;  %v777_v56 = vld [vmem:[#allocation5 + $0x1b8] sm:$0xff] }
  0xfb   :  { %1346 = vmatprep.subr.mxu1 %v1535_v0 }
  0xfc   :  { %1347 = vmatpush3.msra.mxu1 %v503_v57  ;;  %v792_v57 = vld [vmem:[#allocation5 + $0x230] sm:$0xff] }
  0xfd   :  { %1348 = vmatprep.subr.mxu1 %v1535_v0 }
  0xfe   :  { %1349 = vmatpush3.msra.mxu1 %v502_v58  ;;  %v776_v58 = vld [vmem:[#allocation5 + $0x1b0] sm:$0xff] }
  0xff   :  { %1350 = vmatprep.subr.mxu1 %v1535_v0 }
 0x100   :  { %1351 = vmatpush3.msra.mxu1 %v501_v59  ;;  %v791_v59 = vld [vmem:[#allocation5 + $0x228] sm:$0xff] }
 0x101   :  { %1352 = vmatprep.subr.mxu1 %v1535_v0 }
 0x102   :  { %1353 = vmatpush3.msra.mxu1 %v500_v60  ;;  %v775_v60 = vld [vmem:[#allocation5 + $0x1a8] sm:$0xff] }
 0x103   :  { %1354 = vmatprep.subr.mxu1 %v1535_v0 }
 0x104   :  { %1355 = vmatpush3.msra.mxu1 %v499_v61  ;;  %v790_v61 = vld [vmem:[#allocation5 + $0x220] sm:$0xff] }
 0x105   :  { %1356 = vmatprep.subr.mxu1 %v1535_v0 }
 0x106   :  { %1357 = vmatpush3.msra.mxu1 %v498_v62  ;;  %v774_v62 = vld [vmem:[#allocation5 + $0x1a0] sm:$0xff] }
 0x107   :  { %1358 = vmatprep.subr.mxu1 %v1535_v0 }
 0x108   :  { %1359 = vmatpush3.msra.mxu1 %v497_v63  ;;  %v789_v63 = vld [vmem:[#allocation5 + $0x218] sm:$0xff] }
 0x109   :  { %1360 = vmatprep.subr.mxu1 %v1535_v0 }
 0x10a   :  { %1361 = vmatpush3.msra.mxu1 %v496_v1  ;;  %v773_v1 = vld [vmem:[#allocation5 + $0x198] sm:$0xff] }
 0x10b   :  { %1362 = vmatprep.subr.mxu1 %v1535_v0 }
 0x10c   :  { %1363 = vmatpush3.msra.mxu1 %v495_v8  ;;  %v892_v8 = vld [vmem:[#allocation5 + $0x2e8] sm:$0xff] }
 0x10d   :  { %1364 = vmatprep.subr.mxu1 %v1535_v0 }
 0x10e   :  { %1365 = vmatpush3.msra.mxu1 %v494_v9  ;;  %v891_v9 = vld [vmem:[#allocation5 + $0x2e0] sm:$0xff] }
 0x10f   :  { %1366 = vmatprep.subr.mxu1 %v1535_v0 }
 0x110   :  { %1367 = vmatpush3.msra.mxu1 %v493_v10  ;;  %v890_v10 = vld [vmem:[#allocation5 + $0x2d8] sm:$0xff] }
 0x111   :  { %1371 = vmatprep.subr.mxu1 %v1535_v0 }
 0x1b1   :  { %v226_v34 = vpop.f32.mrf.mxu1 }
 0x1b2   :  { %v227_v35 = vadd.f32 %v1101_v33, %v226_v34  ;;  %v788_v34 = vld [vmem:[#allocation5 + $0x210] sm:$0xff] }
 0x1b3   :  { %v1292_v36 = vpop.f32.mrf.mxu1 }
 0x1b4   :  { %v230_v37 = vmax.f32 %v227_v35, 0.0  ;;  %v803_v35 = vld [vmem:[#allocation5 + $0x288] sm:$0xff] }
 0x1b5   :  { %v787_v36 = vld [vmem:[#allocation5 + $0x208] sm:$0xff] }
 0x1b6   :  { %1310 = vmatmul.mubr.msk.f32.vlgmr.msra.gmra.mxu0 %vm246_vm2, %v230_v37  ;;  %v802_v37 = vld [vmem:[#allocation5 + $0x280] sm:$0xff] }
 0x1b7   :  { %1314 = vmatprep.mubr.msk.f32.mxu0 %vm1536_vm0, %v1535_v0  ;;  %1313 = vmatpush3.msra.mxu0 %v321_v38  ;;  %v786_v38 = vld [vmem:[#allocation5 + $0x200] sm:$0xff] }
 0x1b8   :  { %1317 = vmatprep.subr.mxu0 %v1535_v0 }
 0x276   :  { %v316_v40 = vpop.f32.mrf.mxu0 }
 0x277   :  { %v317_v41 = vadd.f32 %v1102_v39, %v316_v40  ;;  %v801_v39 = vld [vmem:[#allocation5 + $0x278] sm:$0xff] }
 0x278   :  { %v1311_v42 = vpop.f32.mrf.mxu0  ;;  %v785_v40 = vld [vmem:[#allocation5 + $0x1f8] sm:$0xff] }
 0x279   :  { %v320_v43 = vmax.f32 %v317_v41, 0.0  ;;  %v800_v41 = vld [vmem:[#allocation5 + $0x270] sm:$0xff] }
 0x27a   :  { %v784_v42 = vld [vmem:[#allocation5 + $0x1f0] sm:$0xff] }
 0x27b   :  { %1070 = vrot.lane.b32.xlu0 %v320_v43, %s1537_s0  ;;  %1315 = vmatmul.mubr.msk.f32.vlgmr.msra.gmra.mxu0 %vm329_vm3, %v320_v43  ;;  %v799_v43 = vld [vmem:[#allocation5 + $0x268] sm:$0xff] }
 0x27c   :  { %1318 = vmatpush3.msra.mxu0 %v411_v44  ;;  %1333 = vmatprep.mubr.msk.f32.mxu0 %vm1536_vm0, %v1535_v0  ;;  %v783_v44 = vld [vmem:[#allocation5 + $0x1e8] sm:$0xff] }
 0x27d   :  { %1319 = vmatprep.subr.mxu0 %v1535_v0 }
 0x27e   :  { %1320 = vmatpush3.msra.mxu0 %v410_v45  ;;  %v798_v45 = vld [vmem:[#allocation5 + $0x260] sm:$0xff] }
 0x27f   :  { %1321 = vmatprep.subr.mxu0 %v1535_v0 }
 0x280   :  { %1322 = vmatpush3.msra.mxu0 %v409_v46  ;;  %v782_v46 = vld [vmem:[#allocation5 + $0x1e0] sm:$0xff] }
 0x281   :  { %1323 = vmatprep.subr.mxu0 %v1535_v0 }
 0x282   :  { %1324 = vmatpush3.msra.mxu0 %v408_v47  ;;  %v797_v47 = vld [vmem:[#allocation5 + $0x258] sm:$0xff] }
 0x283   :  { %1325 = vmatprep.subr.mxu0 %v1535_v0 }
 0x284   :  { %1326 = vmatpush3.msra.mxu0 %v407_v48  ;;  %v781_v48 = vld [vmem:[#allocation5 + $0x1d8] sm:$0xff] }
 0x285   :  { %1327 = vmatprep.subr.mxu0 %v1535_v0 }
 0x286   :  { %1328 = vmatpush3.msra.mxu0 %v406_v49  ;;  %v796_v49 = vld [vmem:[#allocation5 + $0x250] sm:$0xff] }
 0x287   :  { %1329 = vmatprep.subr.mxu0 %v1535_v0 }
 0x288   :  { %1330 = vmatpush3.msra.mxu0 %v405_v50  ;;  %v780_v50 = vld [vmem:[#allocation5 + $0x1d0] sm:$0xff] }
 0x289   :  { %1331 = vmatprep.subr.mxu0 %v1535_v0 }
 0x28a   :  { %1332 = vmatpush3.msra.mxu0 %v404_v51  ;;  %v795_v51 = vld [vmem:[#allocation5 + $0x248] sm:$0xff] }
 0x28b   :  { %1118 = vmatprep.subr.msk.mxu0 %vm603_vm4, %v1538_v25 }
 0x33b   :  { %v399_v4 = vpop.f32.mrf.mxu0 }
 0x33c   :  { %v400_v5 = vadd.f32 %v1104_v2, %v399_v4  ;;  %v897_v2 = vld [vmem:[#allocation5 + $0x310] sm:$0xff]  ;;  %v896_v4 = vld [vmem:[#allocation5 + $0x308] sm:$0xff] }
 0x33d   :  { %v1316_v6 = vpop.f32.mrf.mxu0 }
 0x33e   :  { %v403_v7 = vmax.f32 %v400_v5, 0.0  ;;  %v895_v5 = vld [vmem:[#allocation5 + $0x300] sm:$0xff]  ;;  %v894_v6 = vld [vmem:[#allocation5 + $0x2f8] sm:$0xff] }
 0x340   :  { %1334 = vmatmul.mubr.msk.f32.vlgmr.msra.gmra.mxu0 %vm246_vm2, %v403_v7  ;;  %v893_v7 = vld [vmem:[#allocation5 + $0x2f0] sm:$0xff] }
 0x341   :  { %690 = vmatprep.mubr.f32.mxu0 %v1535_v0  ;;  %1119 = vmatpush1.msk.msra.mxu0 %vm602_vm5, %v1538_v25 }
 0x342   :  { %1120 = vmatprep.subr.msk.mxu0 %vm601_vm6, %v1538_v25 }
 0x343   :  { %1121 = vmatpush1.msk.msra.mxu0 %vm600_vm7, %v1538_v25 }
 0x344   :  { %1122 = vmatmul.mubr.msk.f32.vlgmr.msra.gmra.mxu0 %vm62_vm1, %v1576_v3  ;;  %1123 = vmatprep.subr.msk.mxu0 %vm617_vm8, %v1538_v25 }
 0x345   :  { %1124 = vmatpush1.msk.msra.mxu0 %vm616_vm9, %v1538_v25  ;;  %764 = vmatprep.mubr.f32.mxu0 %v1535_v0 }
 0x346   :  { %1125 = vmatprep.subr.msk.mxu0 %vm615_vm10, %v1538_v25 }
 0x347   :  { %1126 = vmatpush1.msk.msra.mxu0 %vm614_vm11, %v1538_v25  ;;  %v983_v25 = vld [vmem:[#allocation5 + $0x350] sm:$0xff] }
 0x348   :  { %1190 = vmatprep.subr.mxu0 %v804_v26  ;;  %v982_v26 = vld [vmem:[#allocation5 + $0x348] sm:$0xff] }
 0x400   :  { %v488_v12 = vpop.f32.mrf.mxu0 }
 0x401   :  { %v489_v13 = vadd.f32 %v1106_v11, %v488_v12  ;;  %v889_v11 = vld [vmem:[#allocation5 + $0x2d0] sm:$0xff]  ;;  %v888_v12 = vld [vmem:[#allocation5 + $0x2c8] sm:$0xff] }
 0x402   :  { %v1335_v14 = vpop.f32.mrf.mxu0 }
 0x403   :  { %v492_v15 = vmax.f32 %v489_v13, 0.0  ;;  %v887_v13 = vld [vmem:[#allocation5 + $0x2c0] sm:$0xff]  ;;  %v886_v14 = vld [vmem:[#allocation5 + $0x2b8] sm:$0xff] }
 0x405   :  { %1369 = vmatmul.mubr.f32.vlgmr.msra.gmra.mxu1 %v492_v15  ;;  %v692_v15 = vpop.f32.mrf.mxu0 }
 0x406   :  { %1403 = vmatprep.mubr.msk.f32.mxu1 %vm1536_vm0, %v1535_v0  ;;  %1372 = vmatpush3.msra.mxu1 %v897_v2 }
 0x407   :  { %1373 = vmatprep.subr.mxu1 %v1535_v0  ;;  %v694_v16 = vpop.f32.mrf.mxu0 }
 0x408   :  { %1374 = vmatpush3.msra.mxu1 %v896_v4 }
 0x409   :  { %1375 = vmatprep.subr.mxu1 %v1535_v0 }
 0x40a   :  { %1376 = vmatpush3.msra.mxu1 %v895_v5 }
 0x40b   :  { %1377 = vmatprep.subr.mxu1 %v1535_v0 }
 0x40c   :  { %1378 = vmatpush3.msra.mxu1 %v894_v6 }
 0x40d   :  { %1379 = vmatprep.subr.mxu1 %v1535_v0 }
 0x40e   :  { %1380 = vmatpush3.msra.mxu1 %v893_v7 }
 0x40f   :  { %1381 = vmatprep.subr.mxu1 %v1535_v0 }
 0x410   :  { %1382 = vmatpush3.msra.mxu1 %v892_v8 }
 0x411   :  { %1383 = vmatprep.subr.mxu1 %v1535_v0 }
 0x412   :  { %1384 = vmatpush3.msra.mxu1 %v891_v9 }
 0x413   :  { %1385 = vmatprep.subr.mxu1 %v1535_v0 }
 0x414   :  { %1386 = vmatpush3.msra.mxu1 %v890_v10 }
 0x415   :  { %1387 = vmatprep.subr.mxu1 %v1535_v0 }
 0x416   :  { %1388 = vmatpush3.msra.mxu1 %v889_v11 }
 0x417   :  { %1389 = vmatprep.subr.mxu1 %v1535_v0 }
 0x418   :  { %1390 = vmatpush3.msra.mxu1 %v888_v12 }
 0x419   :  { %1391 = vmatprep.subr.mxu1 %v1535_v0 }
 0x41a   :  { %1392 = vmatpush3.msra.mxu1 %v887_v13 }
 0x41b   :  { %1393 = vmatprep.subr.mxu1 %v1535_v0 }
 0x41c   :  { %1394 = vmatpush3.msra.mxu1 %v886_v14 }
 0x41d   :  { %1395 = vmatprep.subr.mxu1 %v1535_v0 }
 0x41e   :  { %1396 = vmatpush3.msra.mxu1 %v885_v21 }
 0x41f   :  { %1397 = vmatprep.subr.mxu1 %v1535_v0 }
 0x420   :  { %1398 = vmatpush3.msra.mxu1 %v884_v22 }
 0x421   :  { %1399 = vmatprep.subr.mxu1 %v1535_v0 }
 0x422   :  { %1400 = vmatpush3.msra.mxu1 %v883_v23 }
 0x423   :  { %1401 = vmatprep.subr.mxu1 %v1535_v0 }
 0x424   :  { %1402 = vmatpush3.msra.mxu1 %v882_v24 }
 0x4c5   :  { %v582_v28 = vpop.f32.mrf.mxu1 }
 0x4c6   :  { %v583_v29 = vadd.f32 %v1108_v27, %v582_v28  ;;  %v981_v27 = vld [vmem:[#allocation5 + $0x340] sm:$0xff]  ;;  %v980_v28 = vld [vmem:[#allocation5 + $0x338] sm:$0xff] }
 0x4c7   :  { %v1370_v30 = vpop.f32.mrf.mxu1 }
 0x4c8   :  { %v1109_v31 = vmul.f32 -1.442695, %v583_v29  ;;  %v979_v29 = vld [vmem:[#allocation5 + $0x330] sm:$0xff] }
 0x4ca   :  { %1436 = vpow2.f32 %v1109_v31  ;;  %v1128_v31 = vld [vmem:[#allocation7 + $0x6] ss:$0 sm:$0xff] }
 0x4d7   :  { %v1437_v32 = vpop.eup %1436 }
 0x4d8   :  { %v589_v33 = vadd.f32 1.0, %v1437_v32 }
 0x4da   :  { %1438 = vrcp.f32 %v589_v33 }
 0x4e7   :  { %v1646_v3 = vpop.eup %1438 }
 0x4e8   :  { %1127 = vmatmul.mubr.msk.f32.vlgmr.msra.gmra.mxu0 %vm62_vm1, %v1646_v3 }
 0x4e9   :  { %1191 = vmatpush3.msra.mxu0 %v788_v34 }
 0x4ea   :  { %1192 = vmatprep.subr.mxu0 %v803_v35  ;;  %v978_v35 = vld [vmem:[#allocation5 + $0x328] sm:$0xff] }
 0x4eb   :  { %1193 = vmatpush3.msra.mxu0 %v787_v36  ;;  %v977_v36 = vld [vmem:[#allocation5 + $0x320] sm:$0xff] }
 0x4ec   :  { %1194 = vmatprep.subr.mxu0 %v802_v37  ;;  %v976_v37 = vld [vmem:[#allocation5 + $0x318] sm:$0xff] }
 0x4ed   :  { %1195 = vmatpush3.msra.mxu0 %v786_v38  ;;  %v1129_v38 = vld [vmem:[#allocation7 + $0x7] ss:$0 sm:$0xff] }
 0x4ee   :  { %1196 = vmatprep.subr.mxu0 %v801_v39 }
 0x4ef   :  { %1197 = vmatpush3.msra.mxu0 %v785_v40 }
 0x4f0   :  { %1198 = vmatprep.subr.mxu0 %v800_v41 }
 0x4f1   :  { %1199 = vmatpush3.msra.mxu0 %v784_v42 }
 0x4f2   :  { %1200 = vmatprep.subr.mxu0 %v799_v43  ;;  %v1130_v43 = vld [vmem:[#allocation7 + $0x8] ss:$0 sm:$0xff] }
 0x4f3   :  { %1201 = vmatpush3.msra.mxu0 %v783_v44 }
 0x4f4   :  { %1202 = vmatprep.subr.mxu0 %v798_v45 }
 0x4f5   :  { %1203 = vmatpush3.msra.mxu0 %v782_v46 }
 0x4f6   :  { %1204 = vmatprep.subr.mxu0 %v797_v47 }
 0x4f7   :  { %1205 = vmatpush3.msra.mxu0 %v781_v48 }
 0x4f8   :  { %1206 = vmatprep.subr.mxu0 %v796_v49 }
 0x4f9   :  { %1207 = vmatpush3.msra.mxu0 %v780_v50 }
 0x4fa   :  { %1208 = vmatprep.subr.mxu0 %v795_v51 }
 0x4fb   :  { %1209 = vmatpush3.msra.mxu0 %v779_v52 }
 0x4fc   :  { %1210 = vmatprep.subr.mxu0 %v794_v53 }
 0x4fd   :  { %1211 = vmatpush3.msra.mxu0 %v778_v54 }
 0x4fe   :  { %1212 = vmatprep.subr.mxu0 %v793_v55 }
 0x4ff   :  { %1213 = vmatpush3.msra.mxu0 %v777_v56 }
 0x500   :  { %1214 = vmatprep.subr.mxu0 %v792_v57 }
 0x501   :  { %1215 = vmatpush3.msra.mxu0 %v776_v58 }
 0x502   :  { %1216 = vmatprep.subr.mxu0 %v791_v59 }
 0x503   :  { %1217 = vmatpush3.msra.mxu0 %v775_v60 }
 0x504   :  { %1218 = vmatprep.subr.mxu0 %v790_v61 }
 0x505   :  { %1219 = vmatpush3.msra.mxu0 %v774_v62 }
 0x506   :  { %1220 = vmatprep.subr.mxu0 %v789_v63 }
 0x507   :  { %1221 = vmatpush3.msra.mxu0 %v773_v1 }
 0x508   :  { %1406 = vmatprep.subr.mxu0 %v1535_v0 }
 0x5a8   :  { %v766_v17 = vpop.f32.mrf.mxu0 }
 0x5a9   :  { %v771_v20 = vmul.f32 %v766_v17, %v692_v15 }
 0x5aa   :  { %v768_v18 = vpop.f32.mrf.mxu0 }
 0x5ab   :  { %v772_v19 = vmul.f32 %v768_v18, %v694_v16 }
 0x5ad   :  { %876 = vmatprep.mubr.f32.mxu0 %v772_v19 }
 0x5ae   :  { %877 = vmatmul.mubr.f32.vlgmr.msra.gmra.mxu0 %v771_v20 }
 0x5af   :  { %1422 = vmatprep.mubr.msk.f32.mxu0 %vm1536_vm0, %v1535_v0  ;;  %1407 = vmatpush3.msra.mxu0 %v983_v25 }
 0x5b0   :  { %1408 = vmatprep.subr.mxu0 %v1535_v0 }
 0x5b1   :  { %1409 = vmatpush3.msra.mxu0 %v982_v26 }
 0x5b2   :  { %1410 = vmatprep.subr.mxu0 %v1535_v0 }
 0x5b3   :  { %1411 = vmatpush3.msra.mxu0 %v981_v27 }
 0x5b4   :  { %1412 = vmatprep.subr.mxu0 %v1535_v0 }
 0x5b5   :  { %1413 = vmatpush3.msra.mxu0 %v980_v28 }
 0x5b6   :  { %1414 = vmatprep.subr.mxu0 %v1535_v0 }
 0x5b7   :  { %1415 = vmatpush3.msra.mxu0 %v979_v29 }
 0x5b8   :  { %1416 = vmatprep.subr.mxu0 %v1535_v0 }
 0x5b9   :  { %1417 = vmatpush3.msra.mxu0 %v978_v35 }
 0x5ba   :  { %1418 = vmatprep.subr.mxu0 %v1535_v0 }
 0x5bb   :  { %1419 = vmatpush3.msra.mxu0 %v977_v36 }
 0x5bc   :  { %1420 = vmatprep.subr.mxu0 %v1535_v0  ;;  %v1071_v0 = vpop.permute.xlu0 %1070 }
 0x5bd   :  { %1421 = vmatpush3.msra.mxu0 %v976_v37  ;;  %v1077_v51 = vsel %vm62_vm1, %v1646_v3, %v1071_v0 }
 0x66e   :  { %v1222_v30 = vpop.f32.mrf.mxu0 }
 0x670   :  { %v1223_v32 = vpop.f32.mrf.mxu0 }
 0x671   :  { %v1224_v33 = vadd.f32 %v1223_v32, %v1222_v30 }
 0x673   :  { %v879_v34 = vadd.f32 %v1224_v33, %v1128_v31 }
 0x675   :  { %1404 = vmatmul.mubr.f32.vlgmr.msra.gmra.mxu1 %v879_v34 }
 0x735   :  { %v971_v39 = vpop.f32.mrf.mxu1 }
 0x736   :  { %v972_v40 = vadd.f32 %v1129_v38, %v971_v39 }
 0x737   :  { %v1405_v41 = vpop.f32.mrf.mxu1 }
 0x738   :  { %v975_v42 = vmax.f32 %v972_v40, 0.0 }
 0x73a   :  { %1423 = vmatmul.mubr.msk.f32.vlgmr.msra.gmra.mxu0 %vm246_vm2, %v975_v42 }
 0x7fa   :  { %v1060_v44 = vpop.f32.mrf.mxu0 }
 0x7fb   :  { %v1061_v45 = vadd.f32 %v1130_v43, %v1060_v44 }
 0x7fc   :  { %v1424_v46 = vpop.f32.mrf.mxu0 }
 0x7fd   :  { %v1132_v47 = vmul.f32 -1.442695, %v1061_v45 }
 0x7ff   :  { %1440 = vpow2.f32 %v1132_v47 }
 0x80c   :  { %v1441_v48 = vpop.eup %1440 }
 0x80d   :  { %v1067_v49 = vadd.f32 1.0, %v1441_v48 }
 0x80f   :  { %1442 = vrcp.f32 %v1067_v49 }
 0x81c   :  { %v1443_v50 = vpop.eup %1442 }
 0x81d   :  { %1074 = vrot.lane.b32.xlu0 %v1443_v50, %s1539_s2 }
 0x88f   :  { %v1075_v52 = vpop.permute.xlu0 %1074 }
 0x890   :  { %v1079_v53 = vsel %vm1078_vm12, %v1077_v51, %v1075_v52 }
 0x891   :  { %v1081_v54 = vsel %vm1080_vm13, %v1079_v53, 0.0 }
 0x892   :  { %1082 = vst [vmem:[#allocation8] sm:$0xff] %v1081_v54 }
 0x893   :  { %1515 = shalt.err (!%p1512_p5)
}
 0x894   :  { %1092 = dma.vmem_to_hbm [thread:$0]  %s1090_s30, 128, %s1684_s3, [#allocation4]  }
 0x895   :  { %1528 = dma.done.wait [#allocation4], 128  }
 0x896   :  { %1529 = vsyncadd [#allocation4], 4294967168 }
 0x897   :  { %1096 = vsyncpa [#allocation3], 1 }
 0x898   :  { %1097 = vsyncpa [#allocation6], 1 }
 0x899   :  { %1098 = vsyncpa [#allocation4], 1 }

</bundles_post_ra>
